<compile_context>
chip_gen: v7x
topology: tpu7x:2x2x1
jax: 0.10.0
libtpu: 0.0.40
codegen_flags: <defaults>
</compile_context>

<pallas_src>
import jax
import jax.numpy as jnp
from jax.experimental import pallas as pl
from jax.experimental.pallas import tpu as pltpu

_LANE_CANDIDATES = (1024, 512, 256, 128)  # lane-dense slab widths (128-multiples)
_MAX_BLOCK_ROWS = 1024                    # 1024 x 1024 x 4 B = 4 MiB f32 tile
_TILE_BYTE_BUDGET = 4 << 20               # per-tile byte target
_VMEM_LIMIT_BYTES = 40 << 20              # accepted on v5e/v6e; < 64 MiB v7x phys


def _round_up(x: int, m: int) -> int:
    return ((x + m - 1) // m) * m


def _scaler_kernel(scale_ref, x_ref, y_ref):
    # scale_ref: (1, 1) f32 tile holding the raw log-scale parameter.
    # exp() runs once per grid step on the otherwise-idle EUP (effectively
    # free for this HBM-bound kernel); the (1,1) result broadcast-multiplies
    # the whole tile on the VPU.
    scale_exp = jnp.exp(scale_ref[...]).astype(x_ref.dtype)   # (1, 1)
    y_ref[...] = x_ref[...] * scale_exp                       # broadcast mul


def _scale_2d(x2d, scale2d, *, donate=False):
    """Run the tiled multiply over a 2D view of x. Zero extra HBM traffic."""
    rows, width = x2d.shape
    itemsize = x2d.dtype.itemsize

    # Per-tile row budget (keep each tile around _TILE_BYTE_BUDGET).
    budget_rows = max(8, ((_TILE_BYTE_BUDGET // (width * itemsize)) // 8) * 8)

    if rows <= 8:
        # Full-extent block on the sublane axis (always a legal block shape).
        block_rows = rows
    else:
        # Aim for >= ~4 grid steps (pipelining + v7x 2-TC split), capped by
        # the max tile size and the per-tile byte budget.
        target = _round_up(pl.cdiv(rows, 4), 8)
        block_rows = max(8, min(_MAX_BLOCK_ROWS, budget_rows, target))

    grid = pl.cdiv(rows, block_rows)   # partial last block handled by Pallas

    extra = {}
    if donate:
        extra["input_output_aliases"] = {1: 0}   # x2d -> y2d

    return pl.pallas_call(
        _scaler_kernel,
        out_shape=jax.ShapeDtypeStruct((rows, width), x2d.dtype),
        grid_spec=pltpu.PrefetchScalarGridSpec(
            num_scalar_prefetch=0,
            grid=(grid,),
            in_specs=[
                pl.BlockSpec((1, 1), lambda i: (0, 0)),              # scale
                pl.BlockSpec((block_rows, width), lambda i: (i, 0)),  # x tile
            ],
            out_specs=pl.BlockSpec((block_rows, width), lambda i: (i, 0)),
        ),
        compiler_params=pltpu.CompilerParams(
            dimension_semantics=("parallel",),
            vmem_limit_bytes=_VMEM_LIMIT_BYTES,
        ),
        **extra,
    )(scale2d, x2d)


def scaler_forward(x, scale, *, donate_x=False):
    """Forward pass of Scaler.

    Args:
      x:        (B, ...) activations (e.g. NCHW), layout-agnostic.
      scale:    (1,) float32 learnable log-scale parameter.
      donate_x: if True, alias x's buffer for the output (only on the
                zero-copy lane-dense path; caller must not reuse x).

    Returns:
      (x * exp(scale)) with x's shape, and scale expanded to (B,).
    """
    B = x.shape[0]
    total = x.size
    scale = scale.reshape((1,)).astype(jnp.float32)
    scale2d = scale.reshape(1, 1)

    # Prefer a lane-dense slab when total divides a 128-multiple (zero-copy
    # reshape both ways, unmasked full-width stores).
    lane = next((l for l in _LANE_CANDIDATES if total % l == 0), None)
    if lane is not None:
        x2d = x.reshape(total // lane, lane)
        y2d = _scale_2d(x2d, scale2d, donate=donate_x)
    else:
        # Ragged: keep the tensor's own trailing dim as the lane axis
        # (zero-copy reshape, masked stores, no pad / slice round trips).
        width = x.shape[-1]
        if width * x.dtype.itemsize > _TILE_BYTE_BUDGET:
            # TODO(synk): tile huge non-128-multiple trailing dims in-kernel;
            # fall back to plain XLA for this pathological case.
            y = x * jnp.exp(scale)[0]
            return y, jnp.broadcast_to(scale, (B,))
        x2d = x.reshape(-1, width)
        y2d = _scale_2d(x2d, scale2d, donate=False)

    y = y2d.reshape(x.shape)
    # log_det is just the parameter broadcast to batch size — plain JAX glue.
    log_det = jnp.broadcast_to(scale, (B,))
    return y, log_det


if __name__ == "__main__":
    key = jax.random.PRNGKey(0)

    # Primary small case consistent with the module (NCHW: B=2, C=4, 16x16).
    B, C, H, W = 2, 4, 16, 16
    x = jax.random.normal(key, (B, C, H, W), dtype=jnp.float32)

    # nn.Parameter(torch.zeros(1)) init -> exp(0) == 1, y == x.
    scale_param = jnp.zeros((1,), dtype=jnp.float32)
    y, log_det = scaler_forward(x, scale_param)
    y = jax.block_until_ready(y)
    log_det = jax.block_until_ready(log_det)
    assert y.shape == x.shape and log_det.shape == (B,)
    assert jnp.allclose(y, x, atol=1e-6), "fwd mismatch (zero scale)"
    assert jnp.allclose(log_det, jnp.zeros((B,))), "log_det mismatch"

    # Non-trivial scale to exercise the in-kernel exp().
    scale_param2 = jnp.array([0.37], dtype=jnp.float32)
    y2, log_det2 = scaler_forward(x, scale_param2)
    y2 = jax.block_until_ready(y2)
    assert jnp.allclose(y2, x * jnp.exp(scale_param2[0]), rtol=1e-6, atol=1e-6), \
        "fwd mismatch (nonzero scale)"
    assert jnp.allclose(log_det2, jnp.broadcast_to(scale_param2, (B,))), "log_det mismatch"

    # Multi-tile lane-dense path (rows=1024 -> 4 grid steps, no padding).
    xb = jax.random.normal(jax.random.PRNGKey(1), (4, 16, 128, 128), jnp.float32)
    yb, ldb = scaler_forward(xb, scale_param2)
    yb = jax.block_until_ready(yb)
    assert jnp.allclose(yb, xb * jnp.exp(scale_param2[0]), rtol=1e-6, atol=1e-6), \
        "fwd mismatch (multi-tile)"
    assert ldb.shape == (4,)

    # Lane-dense path with a PARTIAL last block (rows=40, block_rows=16).
    xp = jax.random.normal(jax.random.PRNGKey(3), (2, 4, 40, 128), jnp.float32)
    yp, ldp = scaler_forward(xp, scale_param2)
    yp = jax.block_until_ready(yp)
    assert jnp.allclose(yp, xp * jnp.exp(scale_param2[0]), rtol=1e-6, atol=1e-6), \
        "fwd mismatch (partial last block)"
    assert ldp.shape == (2,)

    # Ragged shape: zero-copy trailing-dim path (no pad, no output slice).
    xr = jax.random.normal(jax.random.PRNGKey(2), (3, 5, 17, 19), jnp.float32)
    yr, ldr = scaler_forward(xr, scale_param2)
    yr = jax.block_until_ready(yr)
    assert jnp.allclose(yr, xr * jnp.exp(scale_param2[0]), rtol=1e-6, atol=1e-6), \
        "fwd mismatch (ragged)"
    assert ldr.shape == (3,)

    print("KERNEL_OK")
</pallas_src>

<mosaic_0001>
module attributes {stable_mosaic.version = 11 : i64} {
  func.func @_scaler_kernel(%arg0: i32, %arg1: memref<1x1xf32, #tpu.memory_space<vmem>>, %arg2: memref<2x1024xf32, #tpu.memory_space<vmem>>, %arg3: memref<2x1024xf32, #tpu.memory_space<vmem>>) attributes {dimension_semantics = [#tpu.dimension_semantics<parallel>], iteration_bounds = array<i64: 1>, scalar_prefetch = 0 : i64, scratch_operands = 0 : i64, tpu.core_type = #tpu.core_type<tc>, window_params = [{pipeline_mode = #tpu.pipeline_mode<synchronous>, transform_indices = @transform_0, window_bounds = array<i64: 1, 1>}, {transform_indices = @transform_1, window_bounds = array<i64: 2, 1024>}, {transform_indices = @transform_2, window_bounds = array<i64: 2, 1024>}]} {
    %c0 = arith.constant 0 : index
    %c0_0 = arith.constant 0 : index
    %0 = vector.load %arg1[%c0, %c0_0] : memref<1x1xf32, #tpu.memory_space<vmem>>, vector<1x1xf32>
    %1 = math.exp %0 : vector<1x1xf32>
    %c0_1 = arith.constant 0 : index
    %c0_2 = arith.constant 0 : index
    %2 = vector.load %arg2[%c0_1, %c0_2] : memref<2x1024xf32, #tpu.memory_space<vmem>>, vector<2x1024xf32>
    %3 = vector.broadcast %1 : vector<1x1xf32> to vector<2x1024xf32>
    %4 = arith.mulf %2, %3 : vector<2x1024xf32>
    %c0_3 = arith.constant 0 : index
    %c0_4 = arith.constant 0 : index
    %5 = vector.load %arg3[%c0_3, %c0_4] : memref<2x1024xf32, #tpu.memory_space<vmem>>, vector<2x1024xf32>
    tpu.vector_store %arg3[%c0_3, %c0_4], %4 {strides = array<i32>} : memref<2x1024xf32, #tpu.memory_space<vmem>>, vector<2x1024xf32>,
    return
  }
  func.func @transform_0(%arg0: i32) -> (i32, i32) {
    %c0_i32 = arith.constant 0 : i32
    %c0_i32_0 = arith.constant 0 : i32
    %c0_i32_1 = arith.constant 0 : i32
    return %c0_i32, %c0_i32_0 : i32, i32
  }
  func.func @transform_1(%arg0: i32) -> (i32, i32) {
    %c0_i32 = arith.constant 0 : i32
    %c0_i32_0 = arith.constant 0 : i32
    return %arg0, %c0_i32 : i32, i32
  }
  func.func @transform_2(%arg0: i32) -> (i32, i32) {
    %c0_i32 = arith.constant 0 : i32
    %c0_i32_0 = arith.constant 0 : i32
    return %arg0, %c0_i32 : i32, i32
  }
}

</mosaic_0001>

<bundles_post_ra>
// kernel: tpu_custom_call.1
= control target key start
LH: loop header
LB: loop body
LE: loop exit
PB: predicated region body
PF: predicated region fallthrough
CT: control target
= control target key end

     0   :  { %s158_s0 = inlined_call_operand.<no memory space> [shape: f32[1,1], index: 0, kind: input, shape index: {}]   ;;  %s159_s1 = inlined_call_operand.hbm [shape: f32[2,1024], index: 1, kind: input, shape index: {}]   ;;  %s160_s2 = inlined_call_operand.hbm [shape: f32[2,1024], index: 2, kind: output, shape index: {}]  }
   0x1   :  { %v7_v0 = vstv %s158_s0 }
   0x2   :  { %8 = vst [vmem:[#allocation2] sm:$0x1] %v7_v0 }
   0x3   :  { %9 = vsyncpa [#allocation4], 0 }
   0x4   :  { %10 = vsyncpa [#allocation5], 0  ;;  %s113_s11 = smov [#allocation3]   ;;  %s65_s15 = scalar_lea.hbm %s159_s1, 256 }
   0x5   :  { %s19_s12 = sshll.u32 %s113_s11, 4  ;;  %p66_p0 = scmp.ne.s32.totalorder %s159_s1, %s65_s15  ;;  %s20_s12 = int_to_ptr.vmem [resolvable:$true] %s19_s12 }
   0x6   :  { %p69_p1 = scmp.lt.u32.totalorder %s65_s15, %s159_s1 }
   0x8   :  { %p71_p2 = pnand %p69_p1, %p66_p0 }
   0xa   :  { %74 = shalt.err (!%p71_p2)
}
   0xb   :  { %s75_s0 = scalar_lea.vmem %s20_s12, 256  ;;  %p80_p4 = scmp.lt.s32.totalorder %s20_s12, %s20_s12 }
   0xc   :  { %p76_p3 = scmp.ne.s32.totalorder %s20_s12, %s75_s0  ;;  %p81_p5 = scmp.lt.s32.totalorder %s75_s0, %s75_s0 }
   0xe   :  { %p82_p6 = por %p81_p5, %p80_p4 }
  0x10   :  { %p83_p7 = pnand %p82_p6, %p76_p3 }
  0x12   :  { %86 = shalt.err (!%p83_p7)
}
  0x13   :  { %22 = dma.hbm_to_vmem [thread:$0]  %s159_s1, 256, %s20_s12, [#allocation4]  }
  0x14   :  { %109 = dma.done.wait [#allocation4], 256  }
  0x15   :  { %110 = vsyncadd [#allocation4], 4294967040  ;;  %v114_v1 = vmov 0   ;;  %v26_v2 = vld [vmem:[#allocation2] sm:$0x1]  ;;  %v32_v4 = vlaneseq  ;;  %v29_v9 = vld [vmem:[#allocation3] sm:$0xff] }
  0x16   :  { %62 = vset.pattern.permute.xlu0 %v114_v1  ;;  %v27_v3 = vmul.f32 1.442695, %v26_v2  ;;  %v30_v10 = vld [vmem:[#allocation3 + $0x8] sm:$0xff]  ;;  %s115_s22 = smov [#allocation6]  }
  0x17   :  { %v33_v5 = vshrl.u32 %v32_v4, 7  ;;  %s50_s23 = sshll.u32 %s115_s22, 4  ;;  %s51_s23 = int_to_ptr.vmem [resolvable:$true] %s50_s23 }
  0x18   :  { %63 = vpow2.f32 %v27_v3  ;;  %s87_s1 = scalar_lea.vmem %s51_s23, 256  ;;  %p92_p9 = scmp.lt.s32.totalorder %s51_s23, %s51_s23 }
  0x19   :  { %v34_v6 = vsub.s32 0, %v33_v5  ;;  %p88_p8 = scmp.ne.s32.totalorder %s51_s23, %s87_s1  ;;  %p93_p10 = scmp.lt.s32.totalorder %s87_s1, %s87_s1 }
  0x1b   :  { %p94_p11 = por %p93_p10, %p92_p9 }
  0x1d   :  { %p95_p12 = pnand %p94_p11, %p88_p8 }
  0x22   :  { %v64_v7 = vpop.eup %63 }
  0x23   :  { %v35_v8 = vrot.slane %v64_v7, %v34_v6 }
  0x25   :  { %37 = vperm.xlu0 %62, %v35_v8  }
  0xa4   :  { %v38_v11 = vpop.permute.xlu0 %37 }
  0xa5   :  { %v40_v12 = vmul.f32 %v38_v11, %v29_v9  ;;  %v41_v13 = vmul.f32 %v38_v11, %v30_v10 }
  0xa7   :  { %42 = vst [vmem:[#allocation6] sm:$0xff] %v40_v12  ;;  %43 = vst [vmem:[#allocation6 + $0x8] sm:$0xff] %v41_v13 }
  0xa8   :  { %98 = shalt.err (!%p95_p12)
}
  0xa9   :  { %s99_s26 = scalar_lea.hbm %s160_s2, 256 }
  0xaa   :  { %p100_p13 = scmp.ne.s32.totalorder %s160_s2, %s99_s26  ;;  %p103_p0 = scmp.lt.u32.totalorder %s99_s26, %s160_s2 }
  0xac   :  { %p105_p1 = pnand %p103_p0, %p100_p13 }
  0xae   :  { %108 = shalt.err (!%p105_p1)
}
  0xaf   :  { %53 = dma.vmem_to_hbm [thread:$0]  %s51_s23, 256, %s160_s2, [#allocation5]  }
  0xb0   :  { %111 = dma.done.wait [#allocation5], 256  }
  0xb1   :  { %112 = vsyncadd [#allocation5], 4294967040 }
  0xb2   :  { %57 = vsyncpa [#allocation4], 1 }
  0xb3   :  { %58 = vsyncpa [#allocation5], 1 }

</bundles_post_ra>
